<compile_context>
chip_gen: v7x
topology: tpu7x:2x2x1
jax: 0.10.0
libtpu: 0.0.40
codegen_flags: <defaults>
</compile_context>

<pallas_src>
import functools

import jax
import jax.numpy as jnp
from jax.experimental import pallas as pl
from jax.experimental.pallas import tpu as pltpu

_MIB = 1024 * 1024


# ---------------------------------------------------------------------------
# Hardware-aware sizing helpers
# ---------------------------------------------------------------------------
def _vmem_capacity_bytes():
    """Best-effort per-core VMEM capacity (v5e/v6e: 128 MiB, v7x: 64 MiB)."""
    try:
        return int(pltpu.get_tpu_info().vmem_capacity_bytes)
    except Exception:
        pass
    try:
        kind = jax.devices()[0].device_kind.lower()
        if ("v7" in kind) or ("tpu7" in kind) or ("7x" in kind):
            return 64 * _MIB
    except Exception:
        pass
    return 128 * _MIB


def _grid_semantics(num_blocks):
    """v7x: shard the row-block axis across both TensorCores (safe: per-block
    partial outputs are disjoint). Other chips: plain parallel."""
    kind = ""
    try:
        kind = jax.devices()[0].device_kind.lower()
    except Exception:
        pass
    is_v7 = ("v7" in kind) or ("tpu7" in kind) or ("7x" in kind)
    core_parallel = getattr(pltpu, "CORE_PARALLEL", None)
    if is_v7 and num_blocks >= 2 and core_parallel is not None:
        return (core_parallel,)
    return ("parallel",)


# ---------------------------------------------------------------------------
# Pallas kernel: per-block partial sums of softmax cross-entropy over rows.
# ---------------------------------------------------------------------------
def _ce_partial_kernel(logits_ref, tgt_ref, out_ref, *, n_rows, tm, need_mask):
    """Writes (broadcast into a lane-dense (1,8,128) block) the sum over this
    block's valid rows of -log softmax(x)[row, t[row]].

    logits_ref: (tm, C)  input dtype (upcast to f32 in VMEM only)
    tgt_ref:    (tm, 1)  int32 targets
    out_ref:    (1, 8, 128) f32 partial sum for this grid step
    """
    x = logits_ref[...].astype(jnp.float32)                     # (tm, C)
    t = tgt_ref[...]                                            # (tm, 1)

    # Numerically stable log-sum-exp over the class (lane) axis.
    m = jnp.max(x, axis=-1, keepdims=True)                      # (tm, 1)
    lse = m + jnp.log(jnp.sum(jnp.exp(x - m), axis=-1, keepdims=True))

    # Gather logits[row, t[row]] via lane-iota compare + select.
    # NOTE: out-of-range targets silently yield picked=0 (PyTorch would error).
    col = jax.lax.broadcasted_iota(jnp.int32, x.shape, 1)
    picked = jnp.sum(jnp.where(col == t, x, 0.0), axis=-1, keepdims=True)

    loss = lse - picked                                         # (tm, 1)
    if need_mask:
        # Only the per-row mask is needed: all reductions above are per-row, so
        # garbage in OOB tail rows only pollutes that row, which we zero here.
        i = pl.program_id(0)
        row = jax.lax.broadcasted_iota(jnp.int32, (tm, 1), 0) + i * tm
        loss = jnp.where(row < n_rows, loss, 0.0)

    out_ref[...] = jnp.full(out_ref.shape, jnp.sum(loss), dtype=jnp.float32)


def _ce_mean_jax(logits, tgt):
    """Plain-JAX mean cross-entropy (tiny heads / fallback path)."""
    logits = logits.astype(jnp.float32)
    lse = jax.nn.logsumexp(logits, axis=-1)
    picked = jnp.take_along_axis(
        logits, tgt.astype(jnp.int32)[..., None], axis=-1)[..., 0]
    return jnp.mean(lse - picked)


def _reconstruction_ce_mean(logits, targets):
    """Mean CE over M rows of (M, C) logits; Pallas row-streaming when profitable."""
    M, C = logits.shape
    itemsize = jnp.dtype(logits.dtype).itemsize

    capacity = _vmem_capacity_bytes()
    per_buffer_budget = min(16 * _MIB, capacity // 5)   # ~16 MiB v5e/v6e, ~12.8 MiB v7x

    # Per-row VMEM cost: one logits row + the lane-padded (x128) int32 target word.
    per_row_bytes = C * itemsize + 128 * 4

    use_pallas = (
        C >= 128                                   # lane-dense vocab only (else 8x lane waste)
        and M >= 8
        and 8 * per_row_bytes <= per_buffer_budget  # a minimal 8-row block must fit
    )
    if not use_pallas:
        # TODO(synk): add class-axis (online-LSE) tiling for vocabularies too large
        # for a single-row VMEM block instead of falling back to XLA.
        return _ce_mean_jax(logits, targets)

    tm = (per_buffer_budget // per_row_bytes) // 8 * 8
    tm = min(tm, max(8, (M // 8) * 8))              # never exceed the array's row extent
    num_blocks = pl.cdiv(M, tm)
    need_mask = (M % tm) != 0

    tgt2d = targets.astype(jnp.int32).reshape(M, 1)

    # vmem_limit from actual double-buffered usage + slack (headroom-safe on v7x).
    logits_block = tm * C * itemsize
    tgt_block = tm * 128 * 4                         # lane-padded int32
    out_block = 8 * 128 * 4
    vmem_limit = max(2 * (logits_block + tgt_block + out_block) + 4 * _MIB, 16 * _MIB)

    kernel = functools.partial(_ce_partial_kernel, n_rows=M, tm=tm, need_mask=need_mask)
    partials = pl.pallas_call(
        kernel,
        out_shape=jax.ShapeDtypeStruct((num_blocks, 8, 128), jnp.float32),
        grid=(num_blocks,),
        in_specs=[
            pl.BlockSpec((tm, C), lambda i: (i, 0)),
            pl.BlockSpec((tm, 1), lambda i: (i, 0)),
        ],
        # Lane-dense, fully (8,128)-aligned per-block partials -> unmasked stores,
        # and the grid axis is genuinely parallel (disjoint output blocks).
        out_specs=pl.BlockSpec((1, 8, 128), lambda i: (i, 0, 0)),
        compiler_params=pltpu.CompilerParams(
            dimension_semantics=_grid_semantics(num_blocks),
            vmem_limit_bytes=int(vmem_limit),
        ),
    )(logits, tgt2d)
    return jnp.sum(partials[:, 0, 0]) / jnp.float32(M)


# ---------------------------------------------------------------------------
# FsNetLoss forward
# ---------------------------------------------------------------------------
@functools.partial(jax.jit, static_argnames=("alpha",))
def fsnet_loss(re, cls, label, inputs, alpha):
    """JAX/Pallas equivalent of FsNetLoss.forward.

    re:     (N, S, V) reconstruction logits (class dim = V).  For best HBM
            throughput pass bf16; the kernel upcasts to f32 in VMEM only.
    cls:    (N, C)    float classification logits
    label:  (N,)      int   class targets
    inputs: (N, 1, S) int   per-position targets
    """
    # Classification CE: tiny (N, C) — plain JAX (a Pallas launch is pure overhead).
    cls_loss = _ce_mean_jax(cls, label)

    # Reconstruction CE: transpose(1,2) + class-dim CE == flatten the (N, S) positions.
    inputs_sq = jnp.squeeze(inputs, axis=1)            # (N, S); shape-stable under jit
    Nr, S, V = re.shape
    re_flat = re.reshape(Nr * S, V)
    tgt_flat = inputs_sq.reshape(Nr * S)
    re_loss = _reconstruction_ce_mean(re_flat, tgt_flat)

    return cls_loss + jnp.float32(alpha) * re_loss


def _reference_loss(re, cls, label, inputs, alpha):
    """Pure-JAX reference for validation."""
    def ce_mean(logits, tgt):
        logits = logits.astype(jnp.float32)
        lse = jax.nn.logsumexp(logits, axis=-1)
        picked = jnp.take_along_axis(
            logits, tgt.astype(jnp.int32)[..., None], axis=-1)[..., 0]
        return jnp.mean(lse - picked)

    cls_loss = ce_mean(cls, label)
    inputs_sq = jnp.squeeze(inputs, axis=1)
    Nr, S, V = re.shape
    re_loss = ce_mean(re.reshape(Nr * S, V), inputs_sq.reshape(Nr * S))
    return cls_loss + alpha * re_loss


if __name__ == "__main__":
    key = jax.random.PRNGKey(0)
    k1, k2, k3, k4 = jax.random.split(key, 4)

    N, C = 2, 4          # batch, num classes (classification head)
    S, V = 8, 256        # sequence length, vocab size (V >= 128 exercises the Pallas path)
    alpha = 0.5

    cls = jax.random.normal(k1, (N, C), dtype=jnp.float32)
    label = jax.random.randint(k2, (N,), 0, C, dtype=jnp.int32)
    # Stream reconstruction logits as bf16 (kernel upcasts to f32 in VMEM).
    re = jax.random.normal(k3, (N, S, V), dtype=jnp.float32).astype(jnp.bfloat16)
    inputs = jax.random.randint(k4, (N, 1, S), 0, V, dtype=jnp.int32)

    loss = fsnet_loss(re, cls, label, inputs, alpha)
    jax.block_until_ready(loss)

    ref = _reference_loss(re, cls, label, inputs, alpha)
    assert jnp.allclose(loss, ref, atol=1e-4, rtol=1e-4), (loss, ref)

    print("KERNEL_OK")
</pallas_src>

<mosaic_0001>
module attributes {stable_mosaic.version = 11 : i64} {
  func.func @_ce_partial_kernel(%arg0: i32, %arg1: memref<16x256xbf16, #tpu.memory_space<vmem>>, %arg2: memref<16x1xi32, #tpu.memory_space<vmem>>, %arg3: memref<1x8x128xf32, #tpu.memory_space<vmem>>) attributes {dimension_semantics = [#tpu.dimension_semantics<parallel>], iteration_bounds = array<i64: 1>, scalar_prefetch = 0 : i64, scratch_operands = 0 : i64, tpu.core_type = #tpu.core_type<tc>, window_params = [{transform_indices = @transform_0, window_bounds = array<i64: 16, 256>}, {transform_indices = @transform_1, window_bounds = array<i64: 16, 1>}, {transform_indices = @transform_2, window_bounds = array<i64: 1, 8, 128>}]} {
    %c0 = arith.constant 0 : index
    %c0_0 = arith.constant 0 : index
    %0 = vector.load %arg1[%c0, %c0_0] : memref<16x256xbf16, #tpu.memory_space<vmem>>, vector<16x256xbf16>
    %1 = arith.extf %0 : vector<16x256xbf16> to vector<16x256xf32>
    %c0_1 = arith.constant 0 : index
    %c0_2 = arith.constant 0 : index
    %2 = vector.load %arg2[%c0_1, %c0_2] : memref<16x1xi32, #tpu.memory_space<vmem>>, vector<16x1xi32>
    %cst = arith.constant dense<0xFF800000> : vector<16xf32>
    %3 = vector.multi_reduction <maximumf>, %1, %cst [1] : vector<16x256xf32> to vector<16xf32>
    %4 = vector.shape_cast %3 : vector<16xf32> to vector<16x1xf32>
    %5 = vector.broadcast %4 : vector<16x1xf32> to vector<16x256xf32>
    %6 = arith.subf %1, %5 : vector<16x256xf32>
    %7 = math.exp %6 : vector<16x256xf32>
    %cst_3 = arith.constant dense<0.000000e+00> : vector<16xf32>
    %8 = vector.multi_reduction <add>, %7, %cst_3 [1] : vector<16x256xf32> to vector<16xf32>
    %9 = vector.shape_cast %8 : vector<16xf32> to vector<16x1xf32>
    %10 = math.log %9 : vector<16x1xf32>
    %11 = arith.addf %4, %10 : vector<16x1xf32>
    %12 = tpu.iota {dimensions = array<i32: 1>} : vector<16x256xi32>
    %13 = vector.broadcast %2 : vector<16x1xi32> to vector<16x256xi32>
    %14 = arith.cmpi eq, %12, %13 : vector<16x256xi32>
    %cst_4 = arith.constant 0.000000e+00 : f32
    %15 = vector.broadcast %cst_4 : f32 to vector<16x256xf32>
    %16 = arith.select %14, %1, %15 : vector<16x256xi1>, vector<16x256xf32>
    %cst_5 = arith.constant dense<0.000000e+00> : vector<16xf32>
    %17 = vector.multi_reduction <add>, %16, %cst_5 [1] : vector<16x256xf32> to vector<16xf32>
    %18 = vector.shape_cast %17 : vector<16xf32> to vector<16x1xf32>
    %19 = arith.subf %11, %18 : vector<16x1xf32>
    %20 = vector.shape_cast %19 : vector<16x1xf32> to vector<1x16x1xf32>
    %cst_6 = arith.constant dense<0.000000e+00> : vector<1xf32>
    %21 = vector.multi_reduction <add>, %20, %cst_6 [1, 2] : vector<1x16x1xf32> to vector<1xf32>
    %22 = vector.shape_cast %21 : vector<1xf32> to vector<1x1x1xf32>
    %23 = vector.extract %22[0, 0, 0] : f32 from vector<1x1x1xf32>
    %24 = vector.broadcast %23 : f32 to vector<1x8x128xf32>
    %c0_7 = arith.constant 0 : index
    %c0_8 = arith.constant 0 : index
    %c0_9 = arith.constant 0 : index
    %25 = vector.load %arg3[%c0_7, %c0_8, %c0_9] : memref<1x8x128xf32, #tpu.memory_space<vmem>>, vector<1x8x128xf32>
    tpu.vector_store %arg3[%c0_7, %c0_8, %c0_9], %24 {strides = array<i32>} : memref<1x8x128xf32, #tpu.memory_space<vmem>>, vector<1x8x128xf32>,
    return
  }
  func.func @transform_0(%arg0: i32) -> (i32, i32) {
    %c0_i32 = arith.constant 0 : i32
    %c0_i32_0 = arith.constant 0 : i32
    return %arg0, %c0_i32 : i32, i32
  }
  func.func @transform_1(%arg0: i32) -> (i32, i32) {
    %c0_i32 = arith.constant 0 : i32
    %c0_i32_0 = arith.constant 0 : i32
    return %arg0, %c0_i32 : i32, i32
  }
  func.func @transform_2(%arg0: i32) -> (i32, i32, i32) {
    %c0_i32 = arith.constant 0 : i32
    %c0_i32_0 = arith.constant 0 : i32
    %c0_i32_1 = arith.constant 0 : i32
    return %arg0, %c0_i32, %c0_i32_0 : i32, i32, i32
  }
}

</mosaic_0001>

<bundles_post_ra>
// kernel: squeeze.0
= control target key start
LH: loop header
LB: loop body
LE: loop exit
PB: predicated region body
PF: predicated region fallthrough
CT: control target
= control target key end

     0   :  { %s66_s8 = smov 125   ;;  %vm7_vm0 = vcmask 7168   ;;  %s67_s11 = smov 126   ;;  %s117_s0 = inlined_call_operand.vmem [shape: s32[2,8], index: 0, kind: input, shape index: {}]   ;;  %s118_s1 = inlined_call_operand.vmem [shape: s32[16,1], index: 1, kind: output, shape index: {}]  }
   0x1   :  { %v4_v0 = vld [vmem:[%s117_s0] sm:$0x3]  ;;  %s65_s0 = smov 127   ;;  %s68_s12 = smov 124  }
   0x2   :  { %5 = vst [vmem:[#allocation0] sm:$0x3] %v4_v0  ;;  %s69_s13 = smov 123   ;;  %s70_s14 = smov 122  }
   0x3   :  { %s71_s15 = smov 121  }
   0x9   :  { %v9_v1 = vld [vmem:[#allocation0] sm:$0x3]  }
   0xa   :  { %v21_v2 = vld [vmem:[#allocation0] sm:$0x3]   ;;  %10 = vrot.lane.b32.xlu0 %v9_v1, %s65_s0 }
   0xb   :  { %22 = vrot.lane.b32.xlu1 %v21_v2, %s66_s8  ;;  %v15_v3 = vld [vmem:[#allocation0] sm:$0x3]  }
   0xc   :  { %v27_v4 = vld [vmem:[#allocation0] sm:$0x3]  }
   0xd   :  { %v6_v5 = vld [vmem:[#allocation0] sm:$0x3]  }
   0xe   :  { %8 = vst.msk [vmem:[%s118_s1] ss:$8 sm:$0x3] %vm7_vm0, %v6_v5   ;;  %16 = vrot.lane.b32.xlu0 %v15_v3, %s67_s11  ;;  %v33_v6 = vld [vmem:[#allocation0] sm:$0x3]  }
   0xf   :  { %28 = vrot.lane.b32.xlu1 %v27_v4, %s68_s12  ;;  %v39_v7 = vld [vmem:[#allocation0] sm:$0x3]  }
  0x10   :  { %v45_v8 = vld [vmem:[#allocation0] sm:$0x3]  }
  0x12   :  { %34 = vrot.lane.b32.xlu0 %v33_v6, %s69_s13 }
  0x13   :  { %40 = vrot.lane.b32.xlu1 %v39_v7, %s70_s14 }
  0x16   :  { %46 = vrot.lane.b32.xlu0 %v45_v8, %s71_s15 }
  0x7c   :  { %v11_v9 = vpop.permute.xlu0 %10  }
  0x7d   :  { %v23_v10 = vpop.permute.xlu1 %22   ;;  %51 = vst.msk [vmem:[%s118_s1 + $0x1] ss:$8 sm:$0x3] %vm7_vm0, %v11_v9  }
  0x7e   :  { %53 = vst.msk [vmem:[%s118_s1 + $0x3] ss:$8 sm:$0x3] %vm7_vm0, %v23_v10  }
  0x80   :  { %v17_v11 = vpop.permute.xlu0 %16  }
  0x81   :  { %v29_v12 = vpop.permute.xlu1 %28   ;;  %52 = vst.msk [vmem:[%s118_s1 + $0x2] ss:$8 sm:$0x3] %vm7_vm0, %v17_v11  }
  0x82   :  { %54 = vst.msk [vmem:[%s118_s1 + $0x4] ss:$8 sm:$0x3] %vm7_vm0, %v29_v12  }
  0x84   :  { %v35_v13 = vpop.permute.xlu0 %34  }
  0x85   :  { %v41_v14 = vpop.permute.xlu1 %40   ;;  %55 = vst.msk [vmem:[%s118_s1 + $0x5] ss:$8 sm:$0x3] %vm7_vm0, %v35_v13  }
  0x86   :  { %56 = vst.msk [vmem:[%s118_s1 + $0x6] ss:$8 sm:$0x3] %vm7_vm0, %v41_v14  }
  0x88   :  { %v47_v15 = vpop.permute.xlu0 %46  }
  0x89   :  { %57 = vst.msk [vmem:[%s118_s1 + $0x7] ss:$8 sm:$0x3] %vm7_vm0, %v47_v15  }

// kernel: fsnet_loss.1
= control target key start
LH: loop header
LB: loop body
LE: loop exit
PB: predicated region body
PF: predicated region fallthrough
CT: control target
= control target key end

     0   :  { %v110_v2 = vmov 0   ;;  %v49_v14 = vlaneseq  ;;  %vm74_vm4 = vcmask 7168   ;;  %s141_s0 = inlined_call_operand.vmem [shape: bf16[16,256], index: 0, kind: input, shape index: {}]   ;;  %s142_s1 = inlined_call_operand.vmem [shape: s32[16,1], index: 1, kind: input, shape index: {}]   ;;  %s143_s2 = inlined_call_operand.vmem [shape: f32[1,8,128], index: 2, kind: output, shape index: {}]  }
   0x1   :  { %v11_v0 = vld [vmem:[%s141_s0] sm:$0xff]  ;;  %v12_v1 = vld [vmem:[%s141_s0 + $0x8] sm:$0xff]  ;;  %96 = vset.pattern.permute.xlu1 %v110_v2  ;;  %97 = vset.pattern.permute.xlu0 %v110_v2 }
   0x2   :  { %v17_v3 = vld [vmem:[%s142_s1] sm:$0xff]  ;;  %v13_v4 = vunpack.c.l.bf16 %v11_v0  ;;  %v14_v5 = vunpack.c.h.bf16 %v11_v0  ;;  %v15_v6 = vunpack.c.l.bf16 %v12_v1  ;;  %v16_v7 = vunpack.c.h.bf16 %v12_v1  ;;  %v18_v8 = vld [vmem:[%s142_s1 + $0x8] sm:$0xff] }
   0x3   :  { %53 = vperm.xlu1 %96, %v17_v3   ;;  %v50_v20 = vand.u32 127, %v49_v14 }
   0x4   :  { %v19_v9 = vmax.f32 %v13_v4, %v14_v5  ;;  %v22_v10 = vmax.f32 %v15_v6, %v16_v7 }
   0x5   :  { %v51_v24 = vadd.s32 128, %v50_v20 }
   0x6   :  { %20 = vmax.xlane.f32.xlu0 %v19_v9 }
   0x7   :  { %56 = vperm.xlu1 %96, %v18_v8  }
   0xa   :  { %23 = vmax.xlane.f32.xlu0 %v22_v10 }
  0x82   :  { %v54_v23 = vpop.permute.xlu1 %53 }
  0x83   :  { %vm58_vm0 = vcmp.eq.s32.totalorder %v50_v20, %v54_v23  ;;  %vm59_vm1 = vcmp.eq.s32.totalorder %v51_v24, %v54_v23 }
  0x84   :  { %v62_v28 = vsel %vm58_vm0, %v13_v4, 0.0  ;;  %v63_v29 = vsel %vm59_vm1, %v14_v5, 0.0 }
  0x85   :  { %v66_v32 = vadd.f32 %v63_v29, %v62_v28 }
  0x86   :  { %v57_v25 = vpop.permute.xlu1 %56 }
  0x87   :  { %vm60_vm2 = vcmp.eq.s32.totalorder %v50_v20, %v57_v25  ;;  %vm61_vm3 = vcmp.eq.s32.totalorder %v51_v24, %v57_v25 }
  0x88   :  { %v64_v34 = vsel %vm60_vm2, %v15_v6, 0.0  ;;  %v65_v35 = vsel %vm61_vm3, %v16_v7, 0.0 }
  0x89   :  { %v69_v37 = vadd.f32 %v65_v35, %v64_v34 }
  0x93   :  { %v21_v11 = vpop.xlane.xlu0 %20 }
  0x94   :  { %v25_v12 = vsub.f32 %v13_v4, %v21_v11  ;;  %v26_v13 = vsub.f32 %v14_v5, %v21_v11 }
  0x96   :  { %v29_v15 = vmul.f32 1.442695, %v25_v12  ;;  %v31_v16 = vmul.f32 1.442695, %v26_v13 }
  0x97   :  { %v24_v17 = vpop.xlane.xlu0 %23 }
  0x98   :  { %98 = vpow2.f32 %v29_v15  ;;  %v27_v18 = vsub.f32 %v15_v6, %v24_v17  ;;  %v28_v19 = vsub.f32 %v16_v7, %v24_v17 }
  0x99   :  { %100 = vpow2.f32 %v31_v16 }
  0x9a   :  { %v33_v21 = vmul.f32 1.442695, %v27_v18  ;;  %v35_v22 = vmul.f32 1.442695, %v28_v19 }
  0x9c   :  { %102 = vpow2.f32 %v33_v21 }
  0x9d   :  { %104 = vpow2.f32 %v35_v22 }
  0xa2   :  { %v99_v26 = vpop.eup %98 }
  0xa3   :  { %v101_v27 = vpop.eup %100 }
  0xa4   :  { %v37_v30 = vadd.f32 %v101_v27, %v99_v26 }
  0xa6   :  { %v103_v31 = vpop.eup %102  ;;  %38 = vadd.xlane.f32.xlu0 %v37_v30 }
  0xa7   :  { %v105_v33 = vpop.eup %104 }
  0xa8   :  { %v40_v36 = vadd.f32 %v105_v33, %v103_v31 }
  0xaa   :  { %41 = vadd.xlane.f32.xlu1 %v40_v36  ;;  %67 = vadd.xlane.f32.xlu0 %v66_v32 }
  0xae   :  { %70 = vadd.xlane.f32.xlu0 %v69_v37 }
 0x133   :  { %v39_v38 = vpop.xlane.xlu0 %38 }
 0x134   :  { %106 = vlog2.f32 %v39_v38 }
 0x137   :  { %v42_v39 = vpop.xlane.xlu1 %41  ;;  %v68_v42 = vpop.xlane.xlu0 %67 }
 0x138   :  { %108 = vlog2.f32 %v42_v39 }
 0x13b   :  { %v71_v48 = vpop.xlane.xlu0 %70 }
 0x13e   :  { %v107_v40 = vpop.eup %106 }
 0x13f   :  { %v44_v41 = vmul.f32 0.6931472, %v107_v40 }
 0x141   :  { %v47_v43 = vadd.f32 %v44_v41, %v21_v11 }
 0x142   :  { %v109_v44 = vpop.eup %108 }
 0x143   :  { %v46_v45 = vmul.f32 0.6931472, %v109_v44  ;;  %v72_v46 = vsub.f32 %v47_v43, %v68_v42 }
 0x145   :  { %v48_v47 = vadd.f32 %v46_v45, %v24_v17  ;;  %v75_v50 = vsel %vm74_vm4, %v72_v46, 0.0 }
 0x147   :  { %v73_v49 = vsub.f32 %v48_v47, %v71_v48 }
 0x149   :  { %v76_v51 = vsel %vm74_vm4, %v73_v49, 0.0 }
 0x14a   :  { %v77_v52 = vadd.f32 %v76_v51, %v75_v50 }
 0x14c   :  { %78 = vadd.xlane.f32.xlu0 %v77_v52 }
 0x1d9   :  { %v79_v53 = vpop.xlane.xlu0 %78 }
 0x1da   :  { %v80_v54 = vrot.slane %v79_v53, 4 }
 0x1dc   :  { %v81_v55 = vadd.f32 %v80_v54, %v79_v53 }
 0x1de   :  { %v82_v56 = vrot.slane %v81_v55, 2 }
 0x1e0   :  { %v83_v57 = vadd.f32 %v82_v56, %v81_v55 }
 0x1e2   :  { %v84_v58 = vrot.slane %v83_v57, 1 }
 0x1e4   :  { %v85_v59 = vadd.f32 %v84_v58, %v83_v57 }
 0x1e6   :  { %93 = vpush %v85_v59 }
 0x217   :  { %s94_s0 = spop %93 }
 0x218   :  { %v87_v60 = vstv %s94_s0 }
 0x219   :  { %88 = vst [vmem:[%s143_s2] sm:$0xff] %v87_v60 }

</bundles_post_ra>
